<compile_context>
chip_gen: v7x
topology: tpu7x:2x2x1
jax: 0.10.0
libtpu: 0.0.40
codegen_flags: <defaults>
</compile_context>

<pallas_src>
import functools

import jax
import jax.numpy as jnp
from jax.experimental import pallas as pl
from jax.experimental.pallas import tpu as pltpu


def _round_up(x: int, m: int) -> int:
    return ((x + m - 1) // m) * m


def _cdiv(a: int, b: int) -> int:
    return -(-a // b)


def _sublane_multiple(dtype) -> int:
    # 8 sublanes of 32-bit; sub-32-bit dtypes pack along sublanes.
    return {4: 8, 2: 16, 1: 32}[jnp.dtype(dtype).itemsize]


def _pad_2d(a, rows: int, cols: int):
    r, c = a.shape
    if r == rows and c == cols:
        return a
    return jnp.pad(a, ((0, rows - r), (0, cols - c)))


@functools.lru_cache(maxsize=None)
def _vmem_capacity_bytes() -> int:
    try:
        return int(pltpu.get_tpu_info().vmem_capacity_bytes)
    except Exception:
        return 64 << 20  # conservative fallback (v7x per-TC VMEM)


def _vmem_footprint_bytes(tm: int, th: int, dp: int, itemsize: int) -> int:
    """Double-buffered VMEM footprint of one grid step."""
    w = 3 * 2 * dp * th * itemsize   # gate/up/down weight tiles, double-buffered
    x = 2 * tm * dp * itemsize       # x tile (resident, but budget the 2 buffers)
    o = 2 * tm * dp * itemsize       # output tile
    acc = tm * dp * 4                # f32 accumulator scratch
    return w + x + o + acc


def _mlp_kernel(x_ref, wg_ref, wu_ref, wd_ref, o_ref, acc_ref):
    # Grid: (i over L tiles [parallel], j over hidden tiles [reduction]).
    j = pl.program_id(1)

    @pl.when(j == 0)
    def _():
        acc_ref[...] = jnp.zeros_like(acc_ref)

    x = x_ref[...]
    # gate/up projections for this hidden tile (full D folded into one block).
    gate = jnp.dot(x, wg_ref[...], preferred_element_type=jnp.float32)
    up = jnp.dot(x, wu_ref[...], preferred_element_type=jnp.float32)
    # SwiGLU: silu(gate) * up.  exp -> EUP slot; approx reciprocal -> EUP slot
    # (keeps the epilogue off the VALU critical path).
    sig = pl.reciprocal(1.0 + jnp.exp(-gate), approx=True)
    h = gate * sig * up
    # Accumulate the down projection over hidden tiles (f32 accumulator).
    acc_ref[...] += jnp.dot(
        h.astype(wd_ref.dtype), wd_ref[...], preferred_element_type=jnp.float32
    )

    @pl.when(j == pl.num_programs(1) - 1)
    def _():
        o_ref[...] = acc_ref[...].astype(o_ref.dtype)


@functools.partial(jax.jit, static_argnames=("tm", "th"))
def _mlp_pallas(x, wg, wu, wd, *, tm: int, th: int):
    """x: (L, D). wg, wu: (Dp, Hp) pre-padded. wd: (Hp, Dp) pre-padded.

    Returns (L, D) = down(silu(x @ wg) * (x @ wu)).
    """
    L, D = x.shape
    Dp, Hp = wg.shape
    assert wu.shape == (Dp, Hp) and wd.shape == (Hp, Dp), (wg.shape, wu.shape, wd.shape)
    assert Hp % th == 0, (Hp, th)

    itemsize = jnp.dtype(x.dtype).itemsize
    sub = _sublane_multiple(x.dtype)

    # Row tile: clamp to the sequence, keep it sublane-aligned, and (megacore
    # guard) split into >= 2 row tiles when one tile would cover all rows.
    Lr = _round_up(L, sub)
    tm_eff = min(tm, Lr)
    if tm >= Lr and Lr >= 2 * sub:
        tm_eff = max(sub, _round_up(_cdiv(L, 2), sub))
    Lp = _round_up(L, tm_eff)

    # Pad only when the shapes actually require it (no-op for aligned shapes
    # like Qwen's D=1280 with L a multiple of the row tile).
    needs_pad = (Lp != L) or (Dp != D)
    x_in = _pad_2d(x, Lp, Dp) if needs_pad else x

    grid = (Lp // tm_eff, Hp // th)

    # Advisory cost: weights are re-streamed once per L tile (not once total).
    w_itemsize = jnp.dtype(wg.dtype).itemsize
    cost = pl.CostEstimate(
        flops=6 * Lp * Dp * Hp,           # 3 matmuls @ 2*L*D*H each
        transcendentals=Lp * Hp,          # one exp per hidden activation
        bytes_accessed=grid[0] * 3 * Dp * Hp * w_itemsize + 2 * Lp * Dp * itemsize,
    )

    footprint = _vmem_footprint_bytes(tm_eff, th, Dp, itemsize)
    cap = _vmem_capacity_bytes()
    vmem_limit = int(min(0.9 * cap, max(32 << 20, footprint + max(footprint // 2, 8 << 20))))

    out = pl.pallas_call(
        _mlp_kernel,
        out_shape=jax.ShapeDtypeStruct((Lp, Dp), x.dtype),
        grid_spec=pltpu.PrefetchScalarGridSpec(
            num_scalar_prefetch=0,
            grid=grid,
            in_specs=[
                pl.BlockSpec((tm_eff, Dp), lambda i, j: (i, 0)),  # x: resident across j
                pl.BlockSpec((Dp, th), lambda i, j: (0, j)),      # gate weight tile
                pl.BlockSpec((Dp, th), lambda i, j: (0, j)),      # up weight tile
                pl.BlockSpec((th, Dp), lambda i, j: (j, 0)),      # down weight tile
            ],
            out_specs=pl.BlockSpec((tm_eff, Dp), lambda i, j: (i, 0)),
            scratch_shapes=[pltpu.VMEM((tm_eff, Dp), jnp.float32)],
        ),
        compiler_params=pltpu.CompilerParams(
            dimension_semantics=("parallel", "arbitrary"),
            vmem_limit_bytes=vmem_limit,
        ),
        cost_estimate=cost,
    )(x_in, wg, wu, wd)

    if needs_pad:
        out = out[:L, :D]
    return out


class Qwen2_5_VisionMLP:
    """JAX/Pallas equivalent of the PyTorch Qwen2_5_VisionMLP (bias=False, silu).

    Weights are stored as (in, hidden) / (hidden, in), i.e. the transpose of
    the PyTorch nn.Linear weight, so the forward pass is a plain x @ W chain.
    Use dtype=jnp.bfloat16 for the production path (MXU-native, f32 accumulation
    inside the kernel).
    """

    def __init__(
        self,
        in_features: int,
        hidden_features: int,
        *,
        key=None,
        dtype=jnp.float32,
        tm: int | None = None,
        th: int = 512,
    ):
        self.in_features = in_features
        self.hidden_features = hidden_features
        if key is None:
            key = jax.random.PRNGKey(0)
        k1, k2, k3 = jax.random.split(key, 3)

        scale_in = 1.0 / (in_features ** 0.5)
        scale_h = 1.0 / (hidden_features ** 0.5)
        self.wg = (jax.random.normal(k1, (in_features, hidden_features)) * scale_in).astype(dtype)
        self.wu = (jax.random.normal(k2, (in_features, hidden_features)) * scale_in).astype(dtype)
        self.wd = (jax.random.normal(k3, (hidden_features, in_features)) * scale_h).astype(dtype)

        # ---- One-time weight layout (pad once at init, not per call) ----
        Dp = _round_up(in_features, 128)
        Hp = _round_up(hidden_features, 128)

        # Hidden tile: largest multiple of 128 that divides Hp and is <= the
        # requested th -> no dead padded columns in the hidden dim.
        q = Hp // 128
        d_max = max(1, th // 128)
        d = max(dd for dd in range(1, d_max + 1) if q % dd == 0)
        th_eff = d * 128

        itemsize = jnp.dtype(dtype).itemsize
        sub = _sublane_multiple(dtype)
        if tm is None:
            # Largest row tile whose double-buffered footprint fits ~70% of
            # this chip's VMEM.  Large tm amortizes weight-tile DMA so the
            # kernel is MXU-bound (balance point tm ~ 650-700 on v6e/v7x bf16);
            # f32 or small-VMEM chips automatically fall back to smaller tiles.
            budget = int(0.7 * _vmem_capacity_bytes())
            tm = sub
            for cand in (1024, 896, 768, 640, 512, 384, 256, 128, 64, 32, 16, 8):
                if cand % sub:
                    continue
                if _vmem_footprint_bytes(cand, th_eff, Dp, itemsize) <= budget:
                    tm = cand
                    break

        self._tm = int(tm)
        self._th = int(th_eff)
        self._wg_p = _pad_2d(self.wg, Dp, Hp)
        self._wu_p = _pad_2d(self.wu, Dp, Hp)
        self._wd_p = _pad_2d(self.wd, Hp, Dp)

    def __call__(self, x):
        assert x.shape[-1] == self.in_features, (x.shape, self.in_features)
        x = x.astype(self._wg_p.dtype)
        return _mlp_pallas(
            x, self._wg_p, self._wu_p, self._wd_p, tm=self._tm, th=self._th
        )


if __name__ == "__main__":
    # Small shapes consistent with the module's forward: x is (seq, in_features).
    in_features = 64
    hidden_features = 128
    L = 16

    key = jax.random.PRNGKey(0)
    k_x, k_m = jax.random.split(key)

    # fp32 module: correctness check against a pure-JAX reference.  The
    # in-kernel sigmoid uses the approximate EUP reciprocal, so the tolerance
    # is slightly looser than exact f32.
    mlp = Qwen2_5_VisionMLP(in_features, hidden_features, key=k_m, dtype=jnp.float32)
    x = jax.random.normal(k_x, (L, in_features), dtype=jnp.float32)

    out = jax.block_until_ready(mlp(x))

    ref = (jax.nn.silu(x @ mlp.wg) * (x @ mlp.wu)) @ mlp.wd
    assert out.shape == (L, in_features), out.shape
    max_err = float(jnp.max(jnp.abs(out - ref)))
    assert max_err < 1e-2, max_err

    # bf16 production path: verify it compiles/runs and stays finite.
    mlp_bf16 = Qwen2_5_VisionMLP(in_features, hidden_features, key=k_m, dtype=jnp.bfloat16)
    out_bf16 = jax.block_until_ready(mlp_bf16(x))
    assert out_bf16.shape == (L, in_features), out_bf16.shape
    assert bool(jnp.all(jnp.isfinite(out_bf16.astype(jnp.float32))))

    # TODO(synk): tensor-parallel sharding (ColumnParallelLinear /
    # RowParallelLinear all-reduce) and quant_config are not modeled here.
    print("KERNEL_OK")
</pallas_src>

<mosaic_0001>
module attributes {stable_mosaic.version = 11 : i64} {
  func.func @_mlp_kernel(%arg0: i32, %arg1: i32, %arg2: memref<8x128xf32, #tpu.memory_space<vmem>>, %arg3: memref<128x128xf32, #tpu.memory_space<vmem>>, %arg4: memref<128x128xf32, #tpu.memory_space<vmem>>, %arg5: memref<128x128xf32, #tpu.memory_space<vmem>>, %arg6: memref<8x128xf32, #tpu.memory_space<vmem>>, %arg7: memref<8x128xf32, #tpu.memory_space<vmem>>) attributes {dimension_semantics = [#tpu.dimension_semantics<parallel>, #tpu.dimension_semantics<arbitrary>], iteration_bounds = array<i64: 2, 1>, scalar_prefetch = 0 : i64, scratch_operands = 1 : i64, tpu.core_type = #tpu.core_type<tc>, window_params = [{transform_indices = @transform_0, window_bounds = array<i64: 8, 128>}, {transform_indices = @transform_1, window_bounds = array<i64: 128, 128>}, {transform_indices = @transform_2, window_bounds = array<i64: 128, 128>}, {transform_indices = @transform_3, window_bounds = array<i64: 128, 128>}, {transform_indices = @transform_4, window_bounds = array<i64: 8, 128>}]} {
    %c0_i32 = arith.constant 0 : i32
    %0 = arith.cmpi eq, %arg1, %c0_i32 : i32
    %1 = arith.extui %0 : i1 to i32
    %c0_i32_0 = arith.constant 0 : i32
    %2 = arith.cmpi ne, %1, %c0_i32_0 : i32
    scf.if %2 {
      %cst_18 = arith.constant 0.000000e+00 : f32
      %24 = vector.broadcast %cst_18 : f32 to vector<8x128xf32>
      %c0_19 = arith.constant 0 : index
      %c0_20 = arith.constant 0 : index
      %25 = vector.load %arg7[%c0_19, %c0_20] : memref<8x128xf32, #tpu.memory_space<vmem>>, vector<8x128xf32>
      tpu.vector_store %arg7[%c0_19, %c0_20], %24 {strides = array<i32>} : memref<8x128xf32, #tpu.memory_space<vmem>>, vector<8x128xf32>,
    } else {
    }
    %c0 = arith.constant 0 : index
    %c0_1 = arith.constant 0 : index
    %3 = vector.load %arg2[%c0, %c0_1] : memref<8x128xf32, #tpu.memory_space<vmem>>, vector<8x128xf32>
    %c0_2 = arith.constant 0 : index
    %c0_3 = arith.constant 0 : index
    %4 = vector.load %arg3[%c0_2, %c0_3] : memref<128x128xf32, #tpu.memory_space<vmem>>, vector<128x128xf32>
    %cst = arith.constant dense<0.000000e+00> : vector<8x128xf32>
    %5 = tpu.matmul %3, %4, %cst {dimension_numbers = #tpu.dot_dimension_numbers<[1], [0], [0], [1], [0, 0, 1, 1], [], []>} : vector<8x128xf32>, vector<128x128xf32>, vector<8x128xf32> -> vector<8x128xf32>
    %c0_4 = arith.constant 0 : index
    %c0_5 = arith.constant 0 : index
    %6 = vector.load %arg4[%c0_4, %c0_5] : memref<128x128xf32, #tpu.memory_space<vmem>>, vector<128x128xf32>
    %cst_6 = arith.constant dense<0.000000e+00> : vector<8x128xf32>
    %7 = tpu.matmul %3, %6, %cst_6 {dimension_numbers = #tpu.dot_dimension_numbers<[1], [0], [0], [1], [0, 0, 1, 1], [], []>} : vector<8x128xf32>, vector<128x128xf32>, vector<8x128xf32> -> vector<8x128xf32>
    %cst_7 = arith.constant 0.000000e+00 : f32
    %8 = vector.broadcast %cst_7 : f32 to vector<8x128xf32>
    %9 = arith.subf %8, %5 : vector<8x128xf32>
    %10 = math.exp %9 : vector<8x128xf32>
    %cst_8 = arith.constant 1.000000e+00 : f32
    %11 = vector.broadcast %cst_8 : f32 to vector<8x128xf32>
    %12 = arith.addf %11, %10 : vector<8x128xf32>
    %13 = tpu.reciprocal %12 {approx = true} : vector<8x128xf32> -> vector<8x128xf32>
    %14 = arith.mulf %5, %13 : vector<8x128xf32>
    %15 = arith.mulf %14, %7 : vector<8x128xf32>
    %c0_9 = arith.constant 0 : index
    %c0_10 = arith.constant 0 : index
    %16 = vector.load %arg7[%c0_9, %c0_10] : memref<8x128xf32, #tpu.memory_space<vmem>>, vector<8x128xf32>
    %c0_11 = arith.constant 0 : index
    %c0_12 = arith.constant 0 : index
    %17 = vector.load %arg5[%c0_11, %c0_12] : memref<128x128xf32, #tpu.memory_space<vmem>>, vector<128x128xf32>
    %cst_13 = arith.constant dense<0.000000e+00> : vector<8x128xf32>
    %18 = tpu.matmul %15, %17, %cst_13 {dimension_numbers = #tpu.dot_dimension_numbers<[1], [0], [0], [1], [0, 0, 1, 1], [], []>} : vector<8x128xf32>, vector<128x128xf32>, vector<8x128xf32> -> vector<8x128xf32>
    %19 = arith.addf %16, %18 : vector<8x128xf32>
    %c0_14 = arith.constant 0 : index
    %c0_15 = arith.constant 0 : index
    %20 = vector.load %arg7[%c0_14, %c0_15] : memref<8x128xf32, #tpu.memory_space<vmem>>, vector<8x128xf32>
    tpu.vector_store %arg7[%c0_14, %c0_15], %19 {strides = array<i32>} : memref<8x128xf32, #tpu.memory_space<vmem>>, vector<8x128xf32>,
    %c0_i32_16 = arith.constant 0 : i32
    %21 = arith.cmpi eq, %arg1, %c0_i32_16 : i32
    %22 = arith.extui %21 : i1 to i32
    %c0_i32_17 = arith.constant 0 : i32
    %23 = arith.cmpi ne, %22, %c0_i32_17 : i32
    scf.if %23 {
      %c0_18 = arith.constant 0 : index
      %c0_19 = arith.constant 0 : index
      %24 = vector.load %arg7[%c0_18, %c0_19] : memref<8x128xf32, #tpu.memory_space<vmem>>, vector<8x128xf32>
      %c0_20 = arith.constant 0 : index
      %c0_21 = arith.constant 0 : index
      %25 = vector.load %arg6[%c0_20, %c0_21] : memref<8x128xf32, #tpu.memory_space<vmem>>, vector<8x128xf32>
      tpu.vector_store %arg6[%c0_20, %c0_21], %24 {strides = array<i32>} : memref<8x128xf32, #tpu.memory_space<vmem>>, vector<8x128xf32>,
    } else {
    }
    return
  }
  func.func @transform_0(%arg0: i32, %arg1: i32) -> (i32, i32) {
    %c0_i32 = arith.constant 0 : i32
    %c0_i32_0 = arith.constant 0 : i32
    return %arg0, %c0_i32 : i32, i32
  }
  func.func @transform_1(%arg0: i32, %arg1: i32) -> (i32, i32) {
    %c0_i32 = arith.constant 0 : i32
    %c0_i32_0 = arith.constant 0 : i32
    return %c0_i32, %arg1 : i32, i32
  }
  func.func @transform_2(%arg0: i32, %arg1: i32) -> (i32, i32) {
    %c0_i32 = arith.constant 0 : i32
    %c0_i32_0 = arith.constant 0 : i32
    return %c0_i32, %arg1 : i32, i32
  }
  func.func @transform_3(%arg0: i32, %arg1: i32) -> (i32, i32) {
    %c0_i32 = arith.constant 0 : i32
    %c0_i32_0 = arith.constant 0 : i32
    return %arg1, %c0_i32 : i32, i32
  }
  func.func @transform_4(%arg0: i32, %arg1: i32) -> (i32, i32) {
    %c0_i32 = arith.constant 0 : i32
    %c0_i32_0 = arith.constant 0 : i32
    return %arg0, %c0_i32 : i32, i32
  }
}

</mosaic_0001>

<bundles_post_ra>
// kernel: _mlp_pallas.1
= control target key start
LH: loop header
LB: loop body
LE: loop exit
PB: predicated region body
PF: predicated region fallthrough
CT: control target
= control target key end

     0   :  { %s1452_s0 = inlined_call_operand.vmem [shape: f32[16,128], index: 0, kind: input, shape index: {}]   ;;  %s1453_s1 = inlined_call_operand.hbm [shape: f32[128,128], index: 1, kind: input, shape index: {}]   ;;  %s1454_s2 = inlined_call_operand.hbm [shape: f32[128,128], index: 2, kind: input, shape index: {}]   ;;  %s1455_s3 = inlined_call_operand.hbm [shape: f32[128,128], index: 3, kind: input, shape index: {}]   ;;  %s1456_s4 = inlined_call_operand.hbm [shape: f32[16,128], index: 4, kind: output, shape index: {}]  }
   0x1   :  { %1462 = sst [smem:[#allocation14_spill]] %s1454_s2 }
   0x2   :  { %9 = vsyncpa [#allocation4], 0 }
   0x3   :  { %10 = vsyncpa [#allocation7], 0 }
   0x4   :  { %11 = vsyncpa [#allocation5], 0 }
   0x5   :  { %13 = vsyncpa [#allocation5 + $0x1], 0  ;;  %s1215_s15 = smov 0   ;;  %s1217_s16 = smov 0  }
   0x6   :  { %s1219_s17 = smov 0   ;;  %s1221_s18 = smov 0  }
   0x7   :  { %s1223_s19 = smov 0   ;;  %s1225_s20 = smov 0  }
   0x8 LB: > { %s669_s21 = sadd.s32 4294967295, %s1179_s20   ;;  %s670_s22 = sadd.s32 4294967294, %s1179_s20   ;;  %s1179_s20 = sphi %s1225_s20, %s19_s20   ;;  %s1175_s19 = sphi %s1223_s19, %s1480_s19   ;;  %s1171_s18 = sphi %s1221_s18, %s1479_s18   ;;  %s1167_s17 = sphi %s1219_s17, %s1478_s17   ;;  %s1163_s16 = sphi %s1217_s16, %s1477_s16   ;;  %s1159_s15 = sphi %s1215_s15, %s1476_s15  }
   0x9   : > { %s31_s23 = sadd.s32 1, %s1175_s19  ;;  %s142_s24 = sadd.s32 1, %s1167_s17 }
   0xa   : > { %p33_p0 = scmp.ge.s32.totalorder %s31_s23, 2  ;;  %p152_p1 = scmp.ne.s32.totalorder %s1167_s17, %s1163_s16 }
   0xb   : > { %p153_p2 = scmp.eq.s32.totalorder %s669_s21, 1  ;;  %p158_p3 = scmp.ne.s32.totalorder %s1163_s16, %s1159_s15 }
   0xc   : > { %s1482_s23 = smov (%p33_p0, %s31_s23), 0  ;;  %p159_p5 = scmp.eq.s32.totalorder %s670_s22, 1 }
   0xd   : > { %1463 = sst [smem:[#allocation13_spill]] %s1482_s23  ;;  %p1255_p4 = por %p153_p2, %p152_p1 }
   0xe   : > { %s139_s26 = ssub.s32 %s1175_s19, %s1482_s23  ;;  %p671_p6 = scmp.ge.s32.totalorder %s1179_s20, 1 }
   0xf   : > { %s1464_s25 = scalar_select %p1255_p4, 1, 0 }
  0x10   : > { %p140_p7 = scmp.eq.s32.totalorder %s139_s26, 0  ;;  %p1262_p8 = por %p159_p5, %p158_p3 }
  0x11   : > { %p166_p9 = scmp.lt.s32.totalorder %s1179_s20, 3  ;;  %p1274_p11 = scmp.eq.s32.totalorder %s669_s21, 0 }
  0x12   : > { %s1465_s27 = scalar_select %p1262_p8, 1, 0 }
  0x13   : > { %s1268_s28 = scalar_select %p140_p7, %s1167_s17, %s142_s24  }
  0x14   : > { %p1270_p10 = pnand %p671_p6, %p166_p9  ;;  %s1181_s5 = smov [#allocation6]  }
  0x15   : > { %s1467_s30 = scalar_select %p1274_p11, 1, 0 }
  0x16   : > { %s1466_s29 = scalar_select %p1270_p10, 1, 0 }
  0x17   : > { %p928_p12 = pneg %p1270_p10  ;;  %s195_s6 = sshll.u32 %s1181_s5, 4  ;;  %s196_s6 = int_to_ptr.vmem [resolvable:$true] %s195_s6 }
  0x18   : > { %s1182_s8 = smov [#allocation3]   ;;  %s1469_s2 = sld [smem:[#allocation14_spill]] }
  0x19   : > { %p1282_p13 = pnand %p1274_p11, %p928_p12  ;;  %s180_s9 = sshll.u32 %s1182_s8, 4  ;;  %s181_s9 = int_to_ptr.vmem [resolvable:$true] %s180_s9 }
  0x1b   : > { %p1294_p1 = pneg %p1282_p13 }
  0x1e   : > { %s1009_s12 = scalar_lea.hbm %s1469_s2, 2048 }
  0x1f   : > { %p1010_p0 = scmp.ne.s32.totalorder %s1469_s2, %s1009_s12  ;;  %p1016_p5 = scmp.lt.u32.totalorder %s1009_s12, %s1469_s2 }
  0x21   : > { %p1012_p2 = pnand %p1294_p1, %p1010_p0 }
  0x23   : > { %p1013_p3 = pneg %p1012_p2 }
  0x25   : > { %p1018_p6 = pnand %p1016_p5, %p1013_p3 }
  0x27   : > { %1021 = shalt.err (!%p1018_p6)
}
  0x28   : > { %s1022_s26 = scalar_lea.vmem %s196_s6, 2048  ;;  %p1030_p8 = scmp.lt.s32.totalorder %s196_s6, %s196_s6 }
  0x29   : > { %p1023_p7 = scmp.ne.s32.totalorder %s196_s6, %s1022_s26  ;;  %p1031_p4 = scmp.lt.s32.totalorder %s1022_s26, %s1022_s26 }
  0x2b   : > { %p1025_p9 = pnand %p1023_p7, %p1294_p1  ;;  %p1032_p11 = por %p1031_p4, %p1030_p8 }
  0x2d   : > { %p1026_p12 = pneg %p1025_p9 }
  0x2f   : > { %p1033_p10 = pnand %p1032_p11, %p1026_p12 }
  0x31   : > { %1036 = shalt.err (!%p1033_p10)
}
  0x32   : > { %s1183_s5 = smov 128   ;;  %s1184_s8 = smov 8  }
  0x33   : > { %934 = dma.hbm_to_vmem [thread:$0]  (!%p1282_p13), %s1469_s2, 2048, %s196_s6, [#allocation7], %s1183_s5, %s1183_s5, %s1184_s8  }
  0x34   : > { %s1037_s14 = scalar_lea.hbm %s1453_s1, 2048 }
  0x35   : > { %p1038_p4 = scmp.ne.s32.totalorder %s1453_s1, %s1037_s14  ;;  %p1044_p11 = scmp.lt.u32.totalorder %s1037_s14, %s1453_s1 }
  0x37   : > { %p1040_p8 = pnand %p1038_p4, %p1294_p1 }
  0x39   : > { %p1041_p10 = pneg %p1040_p8 }
  0x3b   : > { %p1046_p0 = pnand %p1044_p11, %p1041_p10 }
  0x3d   : > { %1049 = shalt.err (!%p1046_p0)
}
  0x3e   : > { %s1050_s10 = scalar_lea.vmem %s181_s9, 2048  ;;  %p1058_p6 = scmp.lt.s32.totalorder %s181_s9, %s181_s9 }
  0x3f   : > { %p1051_p2 = scmp.ne.s32.totalorder %s181_s9, %s1050_s10  ;;  %p1059_p7 = scmp.lt.s32.totalorder %s1050_s10, %s1050_s10 }
  0x41   : > { %p1053_p3 = pnand %p1051_p2, %p1294_p1  ;;  %p1060_p9 = por %p1059_p7, %p1058_p6 }
  0x43   : > { %p1054_p5 = pneg %p1053_p3 }
  0x45   : > { %p1061_p12 = pnand %p1060_p9, %p1054_p5 }
  0x47   : > { %1064 = shalt.err (!%p1061_p12)
}
  0x48   : > { %931 = dma.hbm_to_vmem [thread:$0]  (!%p1282_p13), %s1453_s1, 2048, %s181_s9, [#allocation4], %s1183_s5, %s1183_s5, %s1184_s8  }
  0x49   : > { %s1185_s11 = smov [#allocation8]   ;;  %s1065_s22 = scalar_lea.hbm %s1455_s3, 2048 }
  0x4a   : > { %s211_s12 = sshll.u32 %s1185_s11, 4  ;;  %p1066_p4 = scmp.ne.s32.totalorder %s1455_s3, %s1065_s22  ;;  %s212_s12 = int_to_ptr.vmem [resolvable:$true] %s211_s12 }
  0x4b   : > { %p1072_p11 = scmp.lt.u32.totalorder %s1065_s22, %s1455_s3 }
  0x4c   : > { %p1068_p8 = pnand %p1066_p4, %p1294_p1 }
  0x4e   : > { %p1069_p10 = pneg %p1068_p8 }
  0x50   : > { %p1074_p0 = pnand %p1072_p11, %p1069_p10 }
  0x52   : > { %1077 = shalt.err (!%p1074_p0)
}
  0x53   : > { %s1078_s9 = scalar_lea.vmem %s212_s12, 2048  ;;  %p1086_p6 = scmp.lt.s32.totalorder %s212_s12, %s212_s12 }
  0x54   : > { %p1079_p2 = scmp.ne.s32.totalorder %s212_s12, %s1078_s9  ;;  %p1087_p7 = scmp.lt.s32.totalorder %s1078_s9, %s1078_s9 }
  0x56   : > { %p1081_p3 = pnand %p1079_p2, %p1294_p1  ;;  %p1088_p9 = por %p1087_p7, %p1086_p6 }
  0x58   : > { %p1082_p5 = pneg %p1081_p3 }
  0x5a   : > { %p1089_p12 = pnand %p1088_p9, %p1082_p5 }
  0x5c   : > { %1092 = shalt.err (!%p1089_p12)
}
  0x5d   : > { %937 = dma.hbm_to_vmem [thread:$0]  (!%p1282_p13), %s1455_s3, 2048, %s212_s12, [#allocation7], %s1183_s5, %s1183_s5, %s1184_s8  }
  0x5e   : > { %p1471_p4 = scmp.ne.s32.totalorder %s1466_s29, 0 }
  0x5f   : > { %p1472_p1 = scmp.ne.s32.totalorder (!%p1471_p4), %s1467_s30, 0 }
  0x60   : > { %234 = sbr.rel (%p1471_p4) target bundleno = 611 (0x263), region = 36 }
  0x67   : > { %1146 = dma.done.wait (%p1472_p1), [#allocation4], 2048  }
  0x68   : > { %1148 = vsyncadd (%p1472_p1), [#allocation4], 4294965248 }
  0x69   : > { %1150 = dma.done.wait (%p1472_p1), [#allocation7], 4096  }
  0x6a   : > { %1152 = vsyncadd (%p1472_p1), [#allocation7], 4294963200  ;;  %v1186_v0 = vmov 0.0|0.0   ;;  %vm1187_vm0 = vmmov 0   ;;  %v1188_v1 = vmov 0.0   ;;  %v278_v2 = vld [vmem:[#allocation3] sm:$0xff] }
  0x6b   : > { %842 = vmatprep.subr.bf16.mxu0 %v1186_v0  ;;  %866 = vmatprep.subr.bf16.mxu1 %v1186_v0  ;;  %v279_v3 = vld [vmem:[#allocation3 + $0x8] sm:$0xff]  ;;  %v280_v4 = vld [vmem:[#allocation3 + $0x10] sm:$0xff]  ;;  %v281_v6 = vld [vmem:[#allocation3 + $0x18] sm:$0xff]  ;;  %p267_p13 = scmp.lt.s32.totalorder %s1171_s18, 1  ;;  %s264_s8 = sand.u32 1, %s1163_s16  }
  0x6c   : > { %769 = vmatprep.mubr.msk.f32.mxu0 %vm1187_vm0, %v1188_v1  ;;  %804 = vmatprep.mubr.msk.f32.mxu1 %vm1187_vm0, %v1188_v1  ;;  %v843_v5 = vpack.c.bf16 %v279_v3, %v278_v2  ;;  %v846_v7 = vpack.c.bf16 %v281_v6, %v280_v4  ;;  %v282_v8 = vld [vmem:[#allocation3 + $0x20] sm:$0xff]  ;;  %v283_v9 = vld [vmem:[#allocation3 + $0x28] sm:$0xff]  ;;  %v366_v13 = vld [vmem:[#allocation6 + $0x10] sm:$0xff]  ;;  %s680_s6 = sshll.u32 %s264_s8, 3  ;;  %s683_s13 = sshll.u32 %s1171_s18, 7 }
  0x6d   : > { %v364_v10 = vld [vmem:[#allocation6] sm:$0xff]  ;;  %v365_v11 = vld [vmem:[#allocation6 + $0x8] sm:$0xff]  ;;  %v367_v14 = vld [vmem:[#allocation6 + $0x18] sm:$0xff]  ;;  %v849_v15 = vpack.c.bf16 %v283_v9, %v282_v8  ;;  %s268_s29 = scalar_select %p267_p13, %s1171_s18, 1 }
  0x6e   : > { %844 = vmatpush3.bf16.msra.mxu0 %v843_v5  ;;  %v867_v12 = vpack.c.bf16 %v365_v11, %v364_v10  ;;  %v284_v16 = vld [vmem:[#allocation3 + $0x30] sm:$0xff]  ;;  %v285_v17 = vld [vmem:[#allocation3 + $0x38] sm:$0xff]  ;;  %v870_v18 = vpack.c.bf16 %v367_v14, %v366_v13  ;;  %v368_v19 = vld [vmem:[#allocation6 + $0x20] sm:$0xff]  ;;  %s266_s11 = scalar_lea.vmem [#allocation9], %s680_s6  ;;  %s1407_s24 = scalar_lea.hbm %s1456_s4, %s683_s13 }
  0x6f   : > { %845 = vmatprep.subr.bf16.mxu0 %v1186_v0  ;;  %v369_v20 = vld [vmem:[#allocation6 + $0x28] sm:$0xff]  ;;  %v852_v21 = vpack.c.bf16 %v285_v17, %v284_v16  ;;  %v286_v22 = vld [vmem:[#allocation3 + $0x40] sm:$0xff]  ;;  %v370_v25 = vld [vmem:[#allocation6 + $0x30] sm:$0xff]  ;;  %s681_s30 = sshll.u32 %s268_s29, 3  ;;  %s565_s12 = sshll.u32 %s266_s11, 4  ;;  %s1402_s12 = int_to_ptr.vmem [resolvable:$true] %s565_s12 }
  0x70   : > { %868 = vmatpush3.bf16.msra.mxu1 %v867_v12  ;;  %v287_v23 = vld [vmem:[#allocation3 + $0x48] sm:$0xff]  ;;  %v873_v24 = vpack.c.bf16 %v369_v20, %v368_v19  ;;  %v371_v26 = vld [vmem:[#allocation6 + $0x38] sm:$0xff]  ;;  %v288_v28 = vld [vmem:[#allocation3 + $0x50] sm:$0xff]  ;;  %s270_s5 = scalar_lea.vmem %s1452_s0, %s681_s30  ;;  %s552_s26 = scalar_lea.sflag [#allocation5], %s264_s8 }
  0x71   : > { %869 = vmatprep.subr.bf16.mxu1 %v1186_v0  ;;  %v855_v27 = vpack.c.bf16 %v287_v23, %v286_v22  ;;  %v289_v29 = vld [vmem:[#allocation3 + $0x58] sm:$0xff]  ;;  %v876_v30 = vpack.c.bf16 %v371_v26, %v370_v25  ;;  %v372_v31 = vld [vmem:[#allocation6 + $0x40] sm:$0xff]  ;;  %v373_v32 = vld [vmem:[#allocation6 + $0x48] sm:$0xff]  ;;  %s1093_s10 = scalar_lea.vmem %s1402_s12, 128  ;;  %p1473_p10 = scmp.ne.s32.totalorder %s1464_s25, 0 }
  0x72   : > { %847 = vmatpush3.bf16.msra.mxu0 %v846_v7  ;;  %v858_v33 = vpack.c.bf16 %v289_v29, %v288_v28  ;;  %v290_v34 = vld [vmem:[#allocation3 + $0x60] sm:$0xff]  ;;  %v291_v35 = vld [vmem:[#allocation3 + $0x68] sm:$0xff]  ;;  %v879_v36 = vpack.c.bf16 %v373_v32, %v372_v31  ;;  %v374_v37 = vld [vmem:[#allocation6 + $0x50] sm:$0xff]  ;;  %p1094_p8 = scmp.ne.s32.totalorder %s1402_s12, %s1093_s10  ;;  %s1189_s18 = smov [#allocation9]  }
  0x73   : > { %848 = vmatprep.subr.bf16.mxu0 %v1186_v0  ;;  %v375_v38 = vld [vmem:[#allocation6 + $0x58] sm:$0xff]  ;;  %v861_v39 = vpack.c.bf16 %v291_v35, %v290_v34  ;;  %v292_v40 = vld [vmem:[#allocation3 + $0x70] sm:$0xff]  ;;  %v376_v43 = vld [vmem:[#allocation6 + $0x60] sm:$0xff]  ;;  %s1097_s9 = sshll.u32 %s1189_s18, 4  ;;  %s1098_s9 = int_to_ptr.vmem [resolvable:$false] %s1097_s9 }
  0x74   : > { %871 = vmatpush3.bf16.msra.mxu1 %v870_v18  ;;  %v293_v41 = vld [vmem:[#allocation3 + $0x78] sm:$0xff]  ;;  %v882_v42 = vpack.c.bf16 %v375_v38, %v374_v37  ;;  %v377_v44 = vld [vmem:[#allocation6 + $0x68] sm:$0xff]  ;;  %v378_v47 = vld [vmem:[#allocation6 + $0x70] sm:$0xff]  ;;  %p1095_p11 = pnand %p1094_p8, %p1473_p10  ;;  %s1099_s2 = scalar_lea.vmem %s1098_s9, 256 }
  0x75   : > { %872 = vmatprep.subr.bf16.mxu1 %v1186_v0  ;;  %v864_v45 = vpack.c.bf16 %v293_v41, %v292_v40  ;;  %v885_v46 = vpack.c.bf16 %v377_v44, %v376_v43  ;;  %v379_v48 = vld [vmem:[#allocation6 + $0x78] sm:$0xff]  ;;  %v277_v49 = vld [vmem:[%s270_s5] sm:$0xff]  ;;  %v458_v51 = vld [vmem:[#allocation8] sm:$0xff]  ;;  %p1100_p2 = scmp.lt.s32.totalorder %s1402_s12, %s1098_s9  ;;  %p1101_p3 = scmp.lt.s32.totalorder %s1099_s2, %s1093_s10 }
  0x76   : > { %850 = vmatpush3.bf16.msra.mxu0 %v849_v15  ;;  %v888_v50 = vpack.c.bf16 %v379_v48, %v378_v47  ;;  %v459_v52 = vld [vmem:[#allocation8 + $0x8] sm:$0xff]  ;;  %v460_v54 = vld [vmem:[#allocation8 + $0x10] sm:$0xff]  ;;  %v461_v55 = vld [vmem:[#allocation8 + $0x18] sm:$0xff]  ;;  %p1096_p0 = pneg %p1095_p11 }
  0x77   : > { %851 = vmatprep.subr.bf16.mxu0 %v1186_v0  ;;  %v891_v53 = vpack.c.bf16 %v459_v52, %v458_v51  ;;  %v894_v56 = vpack.c.bf16 %v461_v55, %v460_v54  ;;  %v462_v57 = vld [vmem:[#allocation8 + $0x20] sm:$0xff]  ;;  %v463_v58 = vld [vmem:[#allocation8 + $0x28] sm:$0xff]  ;;  %v464_v60 = vld [vmem:[#allocation8 + $0x30] sm:$0xff]  ;;  %p1102_p5 = por %p1101_p3, %p1100_p2 }
  0x78   : > { %874 = vmatpush3.bf16.msra.mxu1 %v873_v24  ;;  %v897_v59 = vpack.c.bf16 %v463_v58, %v462_v57  ;;  %v465_v61 = vld [vmem:[#allocation8 + $0x38] sm:$0xff]  ;;  %v466_v63 = vld [vmem:[#allocation8 + $0x40] sm:$0xff]  ;;  %v468_v3 = vld [vmem:[#allocation8 + $0x50] sm:$0xff] }
  0x79   : > { %875 = vmatprep.subr.bf16.mxu1 %v1186_v0  ;;  %v900_v62 = vpack.c.bf16 %v465_v61, %v464_v60  ;;  %v469_v4 = vld [vmem:[#allocation8 + $0x58] sm:$0xff]  ;;  %v470_v6 = vld [vmem:[#allocation8 + $0x60] sm:$0xff]  ;;  %v471_v7 = vld [vmem:[#allocation8 + $0x68] sm:$0xff]  ;;  %p1103_p6 = pnand %p1102_p5, %p1096_p0 }
  0x7a   : > { %853 = vmatpush3.bf16.msra.mxu0 %v852_v21  ;;  %v906_v5 = vpack.c.bf16 %v469_v4, %v468_v3  ;;  %v909_v8 = vpack.c.bf16 %v471_v7, %v470_v6  ;;  %v472_v9 = vld [vmem:[#allocation8 + $0x70] sm:$0xff]  ;;  %v473_v10 = vld [vmem:[#allocation8 + $0x78] sm:$0xff] }
  0x7b   : > { %854 = vmatprep.subr.bf16.mxu0 %v1186_v0  ;;  %v912_v11 = vpack.c.bf16 %v473_v10, %v472_v9 }
  0x7c   : > { %877 = vmatpush3.bf16.msra.mxu1 %v876_v30 }
  0x7d   : > { %878 = vmatprep.subr.bf16.mxu1 %v1186_v0 }
  0x7e   : > { %856 = vmatpush3.bf16.msra.mxu0 %v855_v27 }
  0x7f   : > { %857 = vmatprep.subr.bf16.mxu0 %v1186_v0 }
  0x80   : > { %880 = vmatpush3.bf16.msra.mxu1 %v879_v36 }
  0x81   : > { %881 = vmatprep.subr.bf16.mxu1 %v1186_v0 }
  0x82   : > { %859 = vmatpush3.bf16.msra.mxu0 %v858_v33 }
  0x83   : > { %860 = vmatprep.subr.bf16.mxu0 %v1186_v0 }
  0x84   : > { %883 = vmatpush3.bf16.msra.mxu1 %v882_v42 }
  0x85   : > { %884 = vmatprep.subr.bf16.mxu1 %v1186_v0 }
  0x86   : > { %862 = vmatpush3.bf16.msra.mxu0 %v861_v39 }
  0x87   : > { %863 = vmatprep.subr.bf16.mxu0 %v1186_v0 }
  0x88   : > { %886 = vmatpush3.bf16.msra.mxu1 %v885_v46 }
  0x89   : > { %887 = vmatprep.subr.bf16.mxu1 %v1186_v0 }
  0x8a   : > { %865 = vmatpush3.bf16.msra.mxu0 %v864_v45 }
  0x8b   : > { %890 = vmatprep.subr.bf16.mxu0 %v1186_v0 }
  0x8c   : > { %889 = vmatpush3.bf16.msra.mxu1 %v888_v50 }
  0x8d   : > { %770 = vmatmul.mubr.f32.vlgmr.msra.gmra.mrb[0].mxu0 %v277_v49 }
  0x8e   : > { %839 = vmatprep.mubr.msk.f32.mxu0 %vm1187_vm0, %v1188_v1  ;;  %892 = vmatpush3.bf16.msra.mxu0 %v891_v53  ;;  %v467_v1 = vld [vmem:[#allocation8 + $0x48] sm:$0xff] }
  0x8f   : > { %805 = vmatmul.mubr.f32.vlgmr.msra.gmra.mrb[0].mxu1 %v277_v49  ;;  %893 = vmatprep.subr.bf16.mxu0 %v1186_v0  ;;  %v903_v2 = vpack.c.bf16 %v467_v1, %v466_v63 }
  0x92   : > { %895 = vmatpush3.bf16.msra.mxu0 %v894_v56 }
  0x93   : > { %896 = vmatprep.subr.bf16.mxu0 %v1186_v0 }
  0x96   : > { %898 = vmatpush3.bf16.msra.mxu0 %v897_v59 }
  0x97   : > { %899 = vmatprep.subr.bf16.mxu0 %v1186_v0 }
  0x9a   : > { %901 = vmatpush3.bf16.msra.mxu0 %v900_v62 }
  0x9b   : > { %902 = vmatprep.subr.bf16.mxu0 %v1186_v0 }
  0x9e   : > { %904 = vmatpush3.bf16.msra.mxu0 %v903_v2 }
  0x9f   : > { %905 = vmatprep.subr.bf16.mxu0 %v1186_v0 }
  0xa2   : > { %907 = vmatpush3.bf16.msra.mxu0 %v906_v5 }
  0xa3   : > { %908 = vmatprep.subr.bf16.mxu0 %v1186_v0 }
  0xa6   : > { %910 = vmatpush3.bf16.msra.mxu0 %v909_v8 }
  0xa7   : > { %911 = vmatprep.subr.bf16.mxu0 %v1186_v0 }
  0xaa   : > { %913 = vmatpush3.bf16.msra.mxu0 %v912_v11 }
 0x160   : > { %v360_v12 = vpop.f32.mrb[0].mxu0 }
 0x161   : > { %v450_v13 = vsub.f32 0.0, %v360_v12  ;;  %v771_v14 = vpop.f32.mrb[1].mxu0 }
 0x162   : > { %v446_v16 = vpop.f32.mrb[0].mxu1 }
 0x163   : > { %v451_v15 = vmul.f32 1.442695, %v450_v13  ;;  %v806_v17 = vpop.f32.mrb[1].mxu1 }
 0x165   : > { %1005 = vpow2.f32 %v451_v15 }
 0x16f   : > { %v1006_v18 = vpop.eup %1005 }
 0x170   : > { %v453_v19 = vadd.f32 1.0, %v1006_v18 }
 0x172   : > { %1007 = vrcp.f32 %v453_v19 }
 0x17c   : > { %v1008_v20 = vpop.eup %1007 }
 0x17d   : > { %v455_v21 = vmul.f32 %v1008_v20, %v360_v12 }
 0x17f   : > { %v456_v0 = vmul.f32 %v455_v21, %v446_v16 }
 0x181   : > { %840 = vmatmul.mubr.f32.vlgmr.msra.gmra.mrb[2].mxu0 %v456_v0 }
 0x254   : > { %v540_v22 = vpop.f32.mrb[2].mxu0 }
 0x255   : > { %550 = vst [vmem:[%s266_s11] sm:$0xff] %v540_v22  ;;  %v841_v23 = vpop.f32.mrb[3].mxu0 }
 0x256   : > { %1106 = shalt.err (!%p1103_p6)
}
 0x257   : > { %s1107_s23 = scalar_lea.hbm %s1407_s24, 128  ;;  %s1111_s7 = scalar_lea.hbm %s1456_s4, 256 }
 0x258   : > { %p1108_p7 = scmp.ne.s32.totalorder %s1407_s24, %s1107_s23  ;;  %p1112_p4 = scmp.lt.u32.totalorder %s1407_s24, %s1456_s4 }
 0x259   : > { %p1113_p1 = scmp.lt.u32.totalorder %s1111_s7, %s1107_s23  ;;  %p1115_p8 = scmp.lt.u32.totalorder %s1107_s23, %s1407_s24 }
 0x25a   : > { %p1109_p9 = pnand %p1108_p7, %p1473_p10 }
 0x25b   : > { %p1114_p13 = por %p1113_p1, %p1112_p4 }
 0x25c   : > { %p1110_p12 = pneg %p1109_p9 }
 0x25d   : > { %p1116_p11 = por %p1115_p8, %p1114_p13 }
 0x25f   : > { %p1117_p0 = pnand %p1116_p11, %p1110_p12 }
 0x261   : > { %1120 = shalt.err (!%p1117_p0)
}
 0x262   : > { %926 = dma.vmem_to_hbm [thread:$0]  (%p1473_p10), %s1402_s12, 128, %s1407_s24, %s552_s26  }
 0x263 PF: > { %p948_p2 = scmp.ge.s32.totalorder %s1179_s20, 2  ;;  %s577_s8 = sand.u32 1, %s1159_s15  }
 0x264   : > { %p1474_p3 = scmp.ne.s32.totalorder %s1465_s27, 0  ;;  %s578_s6 = scalar_lea.sflag [#allocation5], %s577_s8 }
 0x266   : > { %p939_p5 = pnand %p948_p2, %p1474_p3 }
 0x268   : > { %1154 = dma.done.wait (!%p939_p5), %s578_s6, 128  }
 0x269   : > { %1156 = vsyncadd (!%p939_p5), %s578_s6, 4294967168  ;;  %s19_s20 = sadd.s32 1, %s1179_s20   ;;  %s1475_s25 = sld [smem:[#allocation13_spill]] }
 0x26a   : > { %p16_p6 = scmp.ge.s32.totalorder %s19_s20, 4   ;;  %s1476_s15 = smov %s1163_s16 }
 0x26b   : > { %s1477_s16 = smov %s1167_s17  ;;  %s1478_s17 = smov %s1268_s28 }
 0x26c   : > { %s1479_s18 = smov %s1175_s19  ;;  %18 = sbr.rel (!%p16_p6) target bundleno = 8 (0x8), region = 95 }
 0x26f   : > { %s1480_s19 = smov %s1475_s25 }
 0x273   :  { %583 = vsyncpa [#allocation4], 1 }
 0x274   :  { %585 = vsyncpa [#allocation4 + $0x1], 1 }
 0x275   :  { %586 = vsyncpa [#allocation7], 1 }
 0x276   :  { %587 = vsyncpa [#allocation5], 1 }
 0x277   :  { %589 = vsyncpa [#allocation5 + $0x1], 1 }

</bundles_post_ra>
